<compile_context>
chip_gen: v7x
topology: tpu7x:2x2x1
jax: 0.10.0
libtpu: 0.0.40
codegen_flags: <defaults>
</compile_context>

<pallas_src>
import jax
import jax.numpy as jnp
import numpy as np
from jax.experimental import pallas as pl
from jax.experimental.pallas import tpu as pltpu

EPS = 1e-5  # torch.nn.LayerNorm default


def _round_up(x, m):
    return ((x + m - 1) // m) * m


def _vmem_budget_bytes():
    """Generation-aware VMEM budget: physical capacity minus headroom."""
    phys = 64 * 1024 * 1024  # conservative fallback (v7x per-TC VMEM)
    try:
        phys = int(pltpu.get_tpu_info().vmem_capacity_bytes)
    except Exception:
        pass
    # Leave room for compiler-internal scratch / semaphores / pipelining.
    return max(32 * 1024 * 1024, phys - 12 * 1024 * 1024)


def _pick_col_block(D, col_block, lane=128):
    """Largest divisor of D that is a multiple of `lane` and <= col_block."""
    c = (min(col_block, D) // lane) * lane
    while c >= lane:
        if D % c == 0:
            return c
        c -= lane
    return D  # D < 128 or not lane-aligned: full-array-dim BlockSpec exemption.


def _working_set_bytes(rb, cb, D, x_bytes, out_bytes, w_bytes):
    x_blk = 2 * rb * D * x_bytes       # double-buffered input rows
    o_blk = 2 * rb * cb * out_bytes    # double-buffered output tile
    w_blk = 2 * D * cb * w_bytes       # W slab (x2 buffers, conservative)
    vecs = 3 * 2 * D * 4               # gamma / beta / bias (tiny)
    scratch = rb * D * w_bytes         # cached LN(x)
    return x_blk + o_blk + w_blk + vecs + scratch


def _prenorm_kernel(x_ref, gamma_ref, beta_ref, w_ref, b_ref, o_ref, y_ref):
    """LayerNorm (f32 stats, one pass) cached per row tile, then MXU matmul.

    Grid: (row tiles, output-column tiles).  LayerNorm runs only on the first
    column step (j == 0) and is cached in the VMEM scratch `y_ref`.
    """
    j = pl.program_id(1)

    @pl.when(j == 0)
    def _():
        x = x_ref[...].astype(jnp.float32)                      # (RB, D)
        mean = jnp.mean(x, axis=-1, keepdims=True)              # (RB, 1)
        mean_sq = jnp.mean(x * x, axis=-1, keepdims=True)       # (RB, 1)
        var = jnp.maximum(mean_sq - mean * mean, 0.0)
        inv_std = jax.lax.rsqrt(var + EPS)                      # (RB, 1)
        scale = gamma_ref[...].astype(jnp.float32) * inv_std    # (RB, D)
        shift = beta_ref[...].astype(jnp.float32) - mean * scale
        y_ref[...] = (x * scale + shift).astype(y_ref.dtype)    # cache (bf16)

    # fn = Linear(dim, dim): W already transposed to (in, out) in the wrapper.
    out = jnp.dot(y_ref[...], w_ref[...],                       # (RB, CB) f32
                  preferred_element_type=jnp.float32)
    out = out + b_ref[...].astype(jnp.float32)
    o_ref[...] = out.astype(o_ref.dtype)


def prenorm_linear(x, gamma, beta, w, b, *,
                   row_block=512, col_block=512,
                   matmul_dtype=jnp.bfloat16, x_stream_dtype=None):
    """x: (B, N, D). Returns fn(LayerNorm(x)) with fn = Linear(D, D).

    gamma/beta: (1, D) LayerNorm affine.  w: (D_out, D_in) torch layout.
    b: (1, D_out).  x_stream_dtype (e.g. jnp.bfloat16) optionally halves the
    x/out HBM traffic; LN statistics stay in f32.
    """
    B, N, D = x.shape
    rows = B * N
    x2 = x.reshape(rows, D)
    if x_stream_dtype is not None:
        x2 = x2.astype(x_stream_dtype)

    budget = _vmem_budget_bytes()
    x_bytes = np.dtype(x2.dtype).itemsize
    out_dtype = x.dtype
    out_bytes = np.dtype(out_dtype).itemsize
    w_bytes = np.dtype(matmul_dtype).itemsize

    # Row tile: large, 8-aligned, clamped to the problem size; split into at
    # least two tiles (when possible) so the "parallel" row axis can shard
    # across both TensorCores on v7x.
    rb = min(row_block, _round_up(rows, 8))
    if rows > 8 and _round_up(rows, rb) // rb < 2:
        rb = max(8, _round_up((rows + 1) // 2, 8))

    # Column tiling: prefer W fully resident (cb = D, constant block index
    # -> DMA'd once for the whole grid); otherwise lane-dense slabs.  Shrink
    # rb before giving up W residency.
    slab = _pick_col_block(D, col_block)
    chosen = None
    for cb in ([D] if slab == D else [D, slab]):
        rb_try = rb
        while (rb_try > 8 and
               _working_set_bytes(rb_try, cb, D, x_bytes, out_bytes, w_bytes)
               > budget):
            rb_try = max(8, _round_up(rb_try // 2, 8))
        if _working_set_bytes(rb_try, cb, D, x_bytes, out_bytes,
                              w_bytes) <= budget:
            chosen = (rb_try, cb)
            break
    if chosen is None:
        chosen = (8, slab)  # best effort for pathologically large D
    rb, cb = chosen

    rows_p = _round_up(rows, rb)
    if rows_p != rows:
        x2 = jnp.pad(x2, ((0, rows_p - rows), (0, 0)))

    # One-time host-side transpose + cast: W stored as (in, out) bf16 so the
    # kernel feeds the MXU directly with no per-step transpose.
    wt = jnp.asarray(w, dtype=jnp.float32).T.astype(matmul_dtype)   # (D, D)
    gamma2 = jnp.asarray(gamma, dtype=jnp.float32).reshape(1, D)
    beta2 = jnp.asarray(beta, dtype=jnp.float32).reshape(1, D)
    b2 = jnp.asarray(b, dtype=jnp.float32).reshape(1, D)

    grid = (rows_p // rb, D // cb)

    out2 = pl.pallas_call(
        _prenorm_kernel,
        out_shape=jax.ShapeDtypeStruct((rows_p, D), out_dtype),
        grid_spec=pltpu.PrefetchScalarGridSpec(
            num_scalar_prefetch=0,
            grid=grid,
            in_specs=[
                pl.BlockSpec((rb, D), lambda i, j: (i, 0)),   # x rows (full D)
                pl.BlockSpec((1, D), lambda i, j: (0, 0)),    # gamma
                pl.BlockSpec((1, D), lambda i, j: (0, 0)),    # beta
                pl.BlockSpec((D, cb), lambda i, j: (0, j)),   # W^T (resident
                                                              #  when cb == D)
                pl.BlockSpec((1, cb), lambda i, j: (0, j)),   # bias slab
            ],
            out_specs=pl.BlockSpec((rb, cb), lambda i, j: (i, j)),
            scratch_shapes=[pltpu.VMEM((rb, D), matmul_dtype)],  # cached LN(x)
        ),
        compiler_params=pltpu.CompilerParams(
            dimension_semantics=("parallel", "arbitrary"),
            vmem_limit_bytes=budget,
        ),
    )(x2, gamma2, beta2, wt, b2)

    if rows_p != rows:
        out2 = out2[:rows]
    return out2.reshape(B, N, D)


def _reference(x, gamma, beta, w, b, matmul_dtype=jnp.bfloat16):
    """Pure-JAX reference mirroring the kernel's dtype choices."""
    xf = x.astype(jnp.float32)
    mean = jnp.mean(xf, axis=-1, keepdims=True)
    var = jnp.mean((xf - mean) ** 2, axis=-1, keepdims=True)
    xn = (xf - mean) * jax.lax.rsqrt(var + EPS)
    y = xn * gamma.astype(jnp.float32) + beta.astype(jnp.float32)
    wt = w.astype(jnp.float32).T.astype(matmul_dtype)
    out = jnp.dot(y.astype(matmul_dtype), wt,
                  preferred_element_type=jnp.float32) + b.astype(jnp.float32)
    return out.astype(x.dtype)


if __name__ == "__main__":
    # Small-but-lane-dense shapes: batch=2, seq=64, hidden=128 (D % 128 == 0).
    B, N, D = 2, 64, 128
    key = jax.random.PRNGKey(0)
    kx, kw, kb = jax.random.split(key, 3)

    x = jax.random.normal(kx, (B, N, D), dtype=jnp.float32)

    # LayerNorm params: torch default init is gamma=1, beta=0.
    gamma = jnp.ones((1, D), dtype=jnp.float32)
    beta = jnp.zeros((1, D), dtype=jnp.float32)

    # fn = Linear(D, D) params, deterministic synthetic init (torch (out,in)).
    # TODO(synk): PreNorm's `fn` is a generic callable; only Linear(dim, dim)
    # is fused here.
    w = jax.random.normal(kw, (D, D), dtype=jnp.float32) * 0.05
    b = jax.random.normal(kb, (1, D), dtype=jnp.float32) * 0.01

    out = prenorm_linear(x, gamma, beta, w, b)
    out = jax.block_until_ready(out)

    ref = _reference(x, gamma, beta, w, b)
    assert out.shape == (B, N, D)
    assert jnp.allclose(out, ref, atol=1e-2, rtol=1e-2), "mismatch vs reference"

    print("KERNEL_OK")
</pallas_src>

<mosaic_0001>
module attributes {stable_mosaic.version = 11 : i64} {
  func.func @_prenorm_kernel(%arg0: i32, %arg1: i32, %arg2: memref<64x128xf32, #tpu.memory_space<vmem>>, %arg3: memref<1x128xf32, #tpu.memory_space<vmem>>, %arg4: memref<1x128xf32, #tpu.memory_space<vmem>>, %arg5: memref<128x128xbf16, #tpu.memory_space<vmem>>, %arg6: memref<1x128xf32, #tpu.memory_space<vmem>>, %arg7: memref<64x128xf32, #tpu.memory_space<vmem>>, %arg8: memref<64x128xbf16, #tpu.memory_space<vmem>>) attributes {dimension_semantics = [#tpu.dimension_semantics<parallel>, #tpu.dimension_semantics<arbitrary>], iteration_bounds = array<i64: 2, 1>, scalar_prefetch = 0 : i64, scratch_operands = 1 : i64, tpu.core_type = #tpu.core_type<tc>, window_params = [{transform_indices = @transform_0, window_bounds = array<i64: 64, 128>}, {pipeline_mode = #tpu.pipeline_mode<synchronous>, transform_indices = @transform_1, window_bounds = array<i64: 1, 128>}, {pipeline_mode = #tpu.pipeline_mode<synchronous>, transform_indices = @transform_2, window_bounds = array<i64: 1, 128>}, {transform_indices = @transform_3, window_bounds = array<i64: 128, 128>}, {transform_indices = @transform_4, window_bounds = array<i64: 1, 128>}, {transform_indices = @transform_5, window_bounds = array<i64: 64, 128>}]} {
    %c0_i32 = arith.constant 0 : i32
    %0 = arith.cmpi eq, %arg1, %c0_i32 : i32
    %1 = arith.extui %0 : i1 to i32
    %c0_i32_0 = arith.constant 0 : i32
    %2 = arith.cmpi ne, %1, %c0_i32_0 : i32
    scf.if %2 {
      %c0_8 = arith.constant 0 : index
      %c0_9 = arith.constant 0 : index
      %10 = vector.load %arg2[%c0_8, %c0_9] : memref<64x128xf32, #tpu.memory_space<vmem>>, vector<64x128xf32>
      %cst_10 = arith.constant dense<0.000000e+00> : vector<64xf32>
      %11 = vector.multi_reduction <add>, %10, %cst_10 [1] : vector<64x128xf32> to vector<64xf32>
      %12 = vector.shape_cast %11 : vector<64xf32> to vector<64x1xf32>
      %cst_11 = arith.constant 1.280000e+02 : f32
      %13 = vector.broadcast %cst_11 : f32 to vector<64x1xf32>
      %14 = arith.divf %12, %13 : vector<64x1xf32>
      %15 = arith.mulf %10, %10 : vector<64x128xf32>
      %cst_12 = arith.constant dense<0.000000e+00> : vector<64xf32>
      %16 = vector.multi_reduction <add>, %15, %cst_12 [1] : vector<64x128xf32> to vector<64xf32>
      %17 = vector.shape_cast %16 : vector<64xf32> to vector<64x1xf32>
      %cst_13 = arith.constant 1.280000e+02 : f32
      %18 = vector.broadcast %cst_13 : f32 to vector<64x1xf32>
      %19 = arith.divf %17, %18 : vector<64x1xf32>
      %20 = arith.mulf %14, %14 : vector<64x1xf32>
      %21 = arith.subf %19, %20 : vector<64x1xf32>
      %cst_14 = arith.constant 0.000000e+00 : f32
      %22 = vector.broadcast %cst_14 : f32 to vector<64x1xf32>
      %23 = arith.maximumf %21, %22 : vector<64x1xf32>
      %cst_15 = arith.constant 9.99999974E-6 : f32
      %24 = vector.broadcast %cst_15 : f32 to vector<64x1xf32>
      %25 = arith.addf %23, %24 : vector<64x1xf32>
      %26 = math.rsqrt %25 : vector<64x1xf32>
      %c0_16 = arith.constant 0 : index
      %c0_17 = arith.constant 0 : index
      %27 = vector.load %arg3[%c0_16, %c0_17] : memref<1x128xf32, #tpu.memory_space<vmem>>, vector<1x128xf32>
      %28 = vector.broadcast %27 : vector<1x128xf32> to vector<64x128xf32>
      %29 = vector.broadcast %26 : vector<64x1xf32> to vector<64x128xf32>
      %30 = arith.mulf %28, %29 : vector<64x128xf32>
      %c0_18 = arith.constant 0 : index
      %c0_19 = arith.constant 0 : index
      %31 = vector.load %arg4[%c0_18, %c0_19] : memref<1x128xf32, #tpu.memory_space<vmem>>, vector<1x128xf32>
      %32 = vector.broadcast %14 : vector<64x1xf32> to vector<64x128xf32>
      %33 = arith.mulf %32, %30 : vector<64x128xf32>
      %34 = vector.broadcast %31 : vector<1x128xf32> to vector<64x128xf32>
      %35 = arith.subf %34, %33 : vector<64x128xf32>
      %36 = arith.mulf %10, %30 : vector<64x128xf32>
      %37 = arith.addf %36, %35 : vector<64x128xf32>
      %38 = arith.truncf %37 : vector<64x128xf32> to vector<64x128xbf16>
      %c0_20 = arith.constant 0 : index
      %c0_21 = arith.constant 0 : index
      %39 = vector.load %arg8[%c0_20, %c0_21] : memref<64x128xbf16, #tpu.memory_space<vmem>>, vector<64x128xbf16>
      tpu.vector_store %arg8[%c0_20, %c0_21], %38 {strides = array<i32>} : memref<64x128xbf16, #tpu.memory_space<vmem>>, vector<64x128xbf16>,
    } else {
    }
    %c0 = arith.constant 0 : index
    %c0_1 = arith.constant 0 : index
    %3 = vector.load %arg8[%c0, %c0_1] : memref<64x128xbf16, #tpu.memory_space<vmem>>, vector<64x128xbf16>
    %c0_2 = arith.constant 0 : index
    %c0_3 = arith.constant 0 : index
    %4 = vector.load %arg5[%c0_2, %c0_3] : memref<128x128xbf16, #tpu.memory_space<vmem>>, vector<128x128xbf16>
    %cst = arith.constant dense<0.000000e+00> : vector<64x128xf32>
    %5 = tpu.matmul %3, %4, %cst {dimension_numbers = #tpu.dot_dimension_numbers<[1], [0], [0], [1], [0, 0, 1, 1], [], []>} : vector<64x128xbf16>, vector<128x128xbf16>, vector<64x128xf32> -> vector<64x128xf32>
    %c0_4 = arith.constant 0 : index
    %c0_5 = arith.constant 0 : index
    %6 = vector.load %arg6[%c0_4, %c0_5] : memref<1x128xf32, #tpu.memory_space<vmem>>, vector<1x128xf32>
    %7 = vector.broadcast %6 : vector<1x128xf32> to vector<64x128xf32>
    %8 = arith.addf %5, %7 : vector<64x128xf32>
    %c0_6 = arith.constant 0 : index
    %c0_7 = arith.constant 0 : index
    %9 = vector.load %arg7[%c0_6, %c0_7] : memref<64x128xf32, #tpu.memory_space<vmem>>, vector<64x128xf32>
    tpu.vector_store %arg7[%c0_6, %c0_7], %8 {strides = array<i32>} : memref<64x128xf32, #tpu.memory_space<vmem>>, vector<64x128xf32>,
    return
  }
  func.func @transform_0(%arg0: i32, %arg1: i32) -> (i32, i32) {
    %c0_i32 = arith.constant 0 : i32
    %c0_i32_0 = arith.constant 0 : i32
    return %arg0, %c0_i32 : i32, i32
  }
  func.func @transform_1(%arg0: i32, %arg1: i32) -> (i32, i32) {
    %c0_i32 = arith.constant 0 : i32
    %c0_i32_0 = arith.constant 0 : i32
    %c0_i32_1 = arith.constant 0 : i32
    return %c0_i32, %c0_i32_0 : i32, i32
  }
  func.func @transform_2(%arg0: i32, %arg1: i32) -> (i32, i32) {
    %c0_i32 = arith.constant 0 : i32
    %c0_i32_0 = arith.constant 0 : i32
    %c0_i32_1 = arith.constant 0 : i32
    return %c0_i32, %c0_i32_0 : i32, i32
  }
  func.func @transform_3(%arg0: i32, %arg1: i32) -> (i32, i32) {
    %c0_i32 = arith.constant 0 : i32
    %c0_i32_0 = arith.constant 0 : i32
    return %c0_i32, %arg1 : i32, i32
  }
  func.func @transform_4(%arg0: i32, %arg1: i32) -> (i32, i32) {
    %c0_i32 = arith.constant 0 : i32
    %c0_i32_0 = arith.constant 0 : i32
    return %c0_i32, %arg1 : i32, i32
  }
  func.func @transform_5(%arg0: i32, %arg1: i32) -> (i32, i32) {
    %c0_i32 = arith.constant 0 : i32
    return %arg0, %arg1 : i32, i32
  }
}

</mosaic_0001>

<bundles_post_ra>
// kernel: tpu_custom_call.1
= control target key start
LH: loop header
LB: loop body
LE: loop exit
PB: predicated region body
PF: predicated region fallthrough
CT: control target
= control target key end

     0   :  { %10 = vsyncpa [#allocation4], 0  ;;  %s1428_s0 = inlined_call_operand.hbm [shape: f32[128,128], index: 0, kind: input, shape index: {}]   ;;  %s1429_s1 = inlined_call_operand.vmem [shape: f32[1,128], index: 1, kind: input, shape index: {}]   ;;  %s1430_s2 = inlined_call_operand.vmem [shape: f32[1,128], index: 2, kind: input, shape index: {}]   ;;  %s1431_s3 = inlined_call_operand.hbm [shape: bf16[128,128], index: 3, kind: input, shape index: {}]   ;;  %s1432_s4 = inlined_call_operand.vmem [shape: f32[1,128], index: 4, kind: input, shape index: {}]   ;;  %s1433_s5 = inlined_call_operand.hbm [shape: f32[128,128], index: 5, kind: output, shape index: {}]  }
   0x1   :  { %12 = vsyncpa [#allocation4 + $0x1], 0 }
   0x2   :  { %13 = vsyncpa [#allocation7], 0 }
   0x3   :  { %14 = vsyncpa [#allocation5], 0 }
   0x4   :  { %16 = vsyncpa [#allocation5 + $0x1], 0  ;;  %s1108_s18 = smov 0   ;;  %s1110_s19 = smov 0  }
   0x5   :  { %s1112_s20 = smov 0   ;;  %s1114_s21 = smov 0  }
   0x6   :  { %s1116_s22 = smov 0   ;;  %s1118_s23 = smov 0  }
   0x7 LB: > { %s737_s24 = sadd.s32 4294967295, %s1067_s23   ;;  %s738_s25 = sadd.s32 4294967294, %s1067_s23   ;;  %s1067_s23 = sphi %s1118_s23, %s22_s23   ;;  %s1063_s22 = sphi %s1116_s22, %s1457_s22   ;;  %s1059_s21 = sphi %s1114_s21, %s1456_s21   ;;  %s1055_s20 = sphi %s1112_s20, %s1455_s20   ;;  %s1051_s19 = sphi %s1110_s19, %s1454_s19   ;;  %s1047_s18 = sphi %s1108_s18, %s1453_s18  }
   0x8   : > { %p54_p0 = scmp.ne.s32.totalorder %s1051_s19, %s1047_s18  ;;  %p1142_p1 = scmp.eq.s32.totalorder %s737_s24, 0 }
   0x9   : > { %p1146_p2 = scmp.eq.s32.totalorder %s737_s24, 1  ;;  %p180_p3 = scmp.eq.s32.totalorder %s738_s25, 1 }
   0xa   : > { %s1438_s26 = scalar_select %p1142_p1, 1, 0 }
   0xb   : > { %s1439_s27 = scalar_select %p1146_p2, 1, 0 }
   0xc   : > { %p1152_p4 = por %p1142_p1, %p54_p0  ;;  %p739_p5 = scmp.ge.s32.totalorder %s1067_s23, 1 }
   0xd   : > { %p1157_p6 = por %p180_p3, %p54_p0  ;;  %p187_p7 = scmp.lt.s32.totalorder %s1067_s23, 3 }
   0xe   : > { %s1440_s28 = scalar_select %p1152_p4, 1, 0 }
   0xf   : > { %s1441_s29 = scalar_select %p1157_p6, 1, 0 }
  0x10   : > { %p1162_p8 = pnand %p739_p5, %p187_p7  ;;  %s1069_s6 = smov [#allocation6]  }
  0x11   : > { %s207_s7 = sshll.u32 %s1069_s6, 4  ;;  %s34_s9 = sadd.s32 1, %s1063_s22  ;;  %s208_s7 = int_to_ptr.vmem [resolvable:$true] %s207_s7 }
  0x12   : > { %s1442_s30 = scalar_select %p1162_p8, 1, 0 }
  0x13   : > { %p828_p9 = pneg %p1162_p8  ;;  %s923_s12 = scalar_lea.hbm %s1431_s3, 1024 }
  0x14   : > { %p924_p12 = scmp.ne.s32.totalorder %s1431_s3, %s923_s12  ;;  %p930_p5 = scmp.lt.u32.totalorder %s923_s12, %s1431_s3 }
  0x15   : > { %p1171_p11 = pnand %p828_p9, %p1142_p1 }
  0x17   : > { %p925_p13 = pneg %p1171_p11 }
  0x19   : > { %p926_p0 = pnand %p925_p13, %p924_p12 }
  0x1b   : > { %p927_p3 = pneg %p926_p0 }
  0x1d   : > { %p932_p7 = pnand %p930_p5, %p927_p3 }
  0x1f   : > { %935 = shalt.err (!%p932_p7)
}
  0x20   : > { %s936_s17 = scalar_lea.vmem %s208_s7, 1024  ;;  %p944_p1 = scmp.lt.s32.totalorder %s208_s7, %s208_s7 }
  0x21   : > { %p937_p9 = scmp.ne.s32.totalorder %s208_s7, %s936_s17  ;;  %p945_p4 = scmp.lt.s32.totalorder %s936_s17, %s936_s17 }
  0x23   : > { %p939_p10 = pnand %p937_p9, %p925_p13  ;;  %p946_p8 = por %p945_p4, %p944_p1 }
  0x25   : > { %p940_p6 = pneg %p939_p10 }
  0x27   : > { %p947_p2 = pnand %p946_p8, %p940_p6 }
  0x29   : > { %950 = shalt.err (!%p947_p2)
}
  0x2a   : > { %s1070_s24 = smov 64   ;;  %s1071_s25 = smov 4  }
  0x2b   : > { %831 = dma.hbm_to_vmem [thread:$0]  (!%p1171_p11), %s1431_s3, 1024, %s208_s7, [#allocation7], %s1070_s24, %s1070_s24, %s1071_s25  }
  0x2c   : > { %p36_p1 = scmp.ge.s32.totalorder %s34_s9, 2  ;;  %s41_s11 = sadd.s32 1, %s1055_s20 }
  0x2d   : > { %p48_p2 = scmp.ne.s32.totalorder %s1055_s20, %s1051_s19  ;;  %p49_p4 = scmp.eq.s32.totalorder %s1067_s23, 0 }
  0x2e   : > { %s1459_s9 = smov (%p36_p1, %s34_s9), 0  ;;  %p1445_p8 = scmp.ne.s32.totalorder %s1439_s27, 0 }
  0x2f   : > { %p1198_p6 = por %p49_p4, %p48_p2  ;;  %s38_s8 = ssub.s32 %s1063_s22, %s1459_s9 }
  0x30   : > { %p1204_p10 = por %p1445_p8, %p48_p2  ;;  %p841_p12 = scmp.lt.s32.totalorder %s1067_s23, 2 }
  0x31   : > { %p39_p11 = scmp.eq.s32.totalorder %s38_s8, 0  ;;  %s227_s7 = sand.u32 1, %s1055_s20  }
  0x32   : > { %s743_s14 = sshll.u32 %s227_s7, 6  ;;  %s766_s16 = sshll.u32 %s1063_s22, 10 }
  0x33   : > { %s1213_s15 = scalar_select %p39_p11, %s1055_s20, %s41_s11  }
  0x34   : > { %s1219_s25 = scalar_lea.hbm %s1428_s0, %s766_s16  ;;  %s231_s27 = scalar_lea.vmem [#allocation3], %s743_s14 }
  0x35   : > { %s238_s6 = sshll.u32 %s231_s27, 4  ;;  %p1225_p13 = pnand %p841_p12, %p1198_p6  ;;  %s1221_s6 = int_to_ptr.vmem [resolvable:$true] %s238_s6 }
  0x36   : > { %s1229_s11 = scalar_lea.sflag [#allocation4], %s227_s7  ;;  %s951_s8 = scalar_lea.hbm %s1219_s25, 1024 }
  0x37   : > { %p952_p0 = scmp.ne.s32.totalorder %s1219_s25, %s951_s8  ;;  %p953_p3 = pneg %p1225_p13 }
  0x38   : > { %s956_s12 = scalar_lea.hbm %s1428_s0, 2048  ;;  %p957_p9 = scmp.lt.u32.totalorder %s1219_s25, %s1428_s0 }
  0x39   : > { %p954_p5 = pnand %p953_p3, %p952_p0  ;;  %p958_p1 = scmp.lt.u32.totalorder %s956_s12, %s951_s8 }
  0x3a   : > { %p960_p4 = scmp.lt.u32.totalorder %s951_s8, %s1219_s25 }
  0x3b   : > { %p955_p7 = pneg %p954_p5  ;;  %p959_p2 = por %p958_p1, %p957_p9 }
  0x3d   : > { %p961_p6 = por %p960_p4, %p959_p2 }
  0x3f   : > { %p962_p8 = pnand %p961_p6, %p955_p7 }
  0x41   : > { %965 = shalt.err (!%p962_p8)
}
  0x42   : > { %s966_s7 = scalar_lea.vmem %s1221_s6, 1024  ;;  %s1072_s27 = smov [#allocation3]  }
  0x43   : > { %p967_p12 = scmp.ne.s32.totalorder %s1221_s6, %s966_s7  ;;  %s971_s14 = sshll.u32 %s1072_s27, 4  ;;  %s972_s14 = int_to_ptr.vmem [resolvable:$false] %s971_s14 }
  0x44   : > { %s973_s16 = scalar_lea.vmem %s972_s14, 2048  ;;  %p974_p5 = scmp.lt.s32.totalorder %s1221_s6, %s972_s14 }
  0x45   : > { %p969_p11 = pnand %p967_p12, %p953_p3  ;;  %p975_p9 = scmp.lt.s32.totalorder %s973_s16, %s966_s7 }
  0x47   : > { %p970_p0 = pneg %p969_p11  ;;  %p976_p1 = por %p975_p9, %p974_p5 }
  0x49   : > { %p977_p2 = pnand %p976_p1, %p970_p0 }
  0x4b   : > { %980 = shalt.err (!%p977_p2)
}
  0x4c   : > { %s1073_s8 = smov 128   ;;  %s1074_s12 = smov 8  }
  0x4d   : > { %835 = dma.hbm_to_vmem [thread:$0]  (!%p1225_p13), %s1219_s25, 1024, %s1221_s6, %s1229_s11, %s1073_s8, %s1073_s8, %s1074_s12  }
  0x4e   : > { %p1448_p3 = scmp.ne.s32.totalorder %s1442_s30, 0 }
  0x4f   : > { %s1260_s17 = sand.u32 (!%p1448_p3), 1, %s1051_s19   ;;  %p1449_p7 = scmp.ne.s32.totalorder (!%p1448_p3), %s1440_s28, 0 }
  0x50   : > { %250 = sbr.rel (%p1448_p3) target bundleno = 524 (0x20c), region = 40  ;;  %s747_s24 = sshll.u32 (!%p1448_p3), %s1260_s17, 6 }
  0x51   : > { %s253_s7 = scalar_lea.sflag (!%p1448_p3), [#allocation4], %s1260_s17  ;;  %s256_s27 = scalar_lea.vmem (!%p1448_p3), [#allocation3], %s747_s24 }
  0x57   : > { %1034 = dma.done.wait (%p1449_p7), %s253_s7, 1024  }
  0x58   : > { %1036 = vsyncadd (%p1449_p7), %s253_s7, 4294966272  ;;  %p1450_p13 = scmp.ne.s32.totalorder %s1438_s26, 0 }
  0x5a   : > { %1038 = dma.done.wait (%p1450_p13), [#allocation7], 1024  }
  0x5b   : > { %1040 = vsyncadd (%p1450_p13), [#allocation7], 4294966272  ;;  %v1274_v0 = vld [vmem:[%s256_s27 + $0x20] sm:$0xff]  ;;  %v1280_v2 = vld [vmem:[%s256_s27 + $0x28] sm:$0xff]  ;;  %s289_s11 = scalar_lea.vmem [#allocation8], %s747_s24  ;;  %s767_s16 = sshll.u32 %s1059_s21, 10 }
  0x5c   : > { %v1276_v1 = vld [vmem:[%s256_s27] sm:$0xff]  ;;  %316 = vadd.xlane.f32.xlu1 %v1274_v0  ;;  %v1282_v3 = vld [vmem:[%s256_s27 + $0x8] sm:$0xff]  ;;  %v1284_v4 = vld [vmem:[%s256_s27 + $0x18] sm:$0xff]  ;;  %v338_v10 = vmul.f32 %v1280_v2, %v1280_v2  ;;  %v337_v11 = vmul.f32 %v1274_v0, %v1274_v0  ;;  %s630_s14 = sshll.u32 %s289_s11, 4  ;;  %s1379_s21 = scalar_lea.hbm %s1433_s5, %s767_s16  ;;  %s1374_s14 = int_to_ptr.vmem [resolvable:$true] %s630_s14 }
  0x5d   : > { %308 = vadd.xlane.f32.xlu0 %v1276_v1  ;;  %v1286_v5 = vld [vmem:[%s256_s27 + $0x10] sm:$0xff]  ;;  %v1292_v6 = vld [vmem:[%s256_s27 + $0x38] sm:$0xff]  ;;  %v334_v8 = vmul.f32 %v1282_v3, %v1282_v3  ;;  %v333_v9 = vmul.f32 %v1276_v1, %v1276_v1  ;;  %v336_v12 = vmul.f32 %v1284_v4, %v1284_v4  ;;  %v899_v16 = vld [vmem:[#allocation6] sm:$0xff]   ;;  %s616_s24 = scalar_lea.sflag [#allocation5], %s1260_s17  ;;  %s981_s7 = scalar_lea.vmem %s1374_s14, 1024 }
  0x5e   : > { %v1294_v7 = vld [vmem:[%s256_s27 + $0x30] sm:$0xff]  ;;  %v335_v13 = vmul.f32 %v1286_v5, %v1286_v5  ;;  %v340_v14 = vmul.f32 %v1292_v6, %v1292_v6  ;;  %780 = vmatprep.subr.bf16.mxu0 %v899_v16  ;;  %804 = vmatprep.subr.bf16.mxu1 %v899_v16  ;;  %v900_v17 = vld [vmem:[#allocation6 + $0x8] sm:$0xff]   ;;  %v902_v19 = vld [vmem:[#allocation6 + $0x18] sm:$0xff]   ;;  %p982_p4 = scmp.ne.s32.totalorder %s1374_s14, %s981_s7  ;;  %s1075_s27 = smov [#allocation8]  }
  0x5f   : > { %v339_v15 = vmul.f32 %v1294_v7, %v1294_v7  ;;  %781 = vmatpush3.bf16.msra.mxu0 %v899_v16  ;;  %812 = vmatpush3.bf16.msra.mxu1 %v899_v16  ;;  %v901_v18 = vld [vmem:[#allocation6 + $0x10] sm:$0xff]   ;;  %v903_v20 = vld [vmem:[#allocation6 + $0x20] sm:$0xff]   ;;  %v904_v21 = vld [vmem:[#allocation6 + $0x28] sm:$0xff]   ;;  %s985_s26 = sshll.u32 %s1075_s27, 4  ;;  %s986_s26 = int_to_ptr.vmem [resolvable:$false] %s985_s26 }
  0x60   : > { %318 = vadd.xlane.f32.xlu1 %v1280_v2  ;;  %782 = vmatprep.subr.bf16.mxu0 %v900_v17  ;;  %v905_v22 = vld [vmem:[#allocation6 + $0x30] sm:$0xff]   ;;  %v906_v23 = vld [vmem:[#allocation6 + $0x38] sm:$0xff]   ;;  %p983_p6 = pnand %p982_p4, %p1204_p10  ;;  %s987_s28 = scalar_lea.vmem %s986_s26, 2048 }
  0x61   : > { %310 = vadd.xlane.f32.xlu0 %v1282_v3  ;;  %805 = vmatprep.subr.bf16.mxu1 %v900_v17  ;;  %p988_p12 = scmp.lt.s32.totalorder %s1374_s14, %s986_s26  ;;  %p989_p11 = scmp.lt.s32.totalorder %s987_s28, %s981_s7 }
  0x62   : > { %p984_p8 = pneg %p983_p6 }
  0x63   : > { %783 = vmatpush3.bf16.msra.mxu0 %v900_v17  ;;  %813 = vmatpush3.bf16.msra.mxu1 %v900_v17  ;;  %p990_p0 = por %p989_p11, %p988_p12 }
  0x64   : > { %314 = vadd.xlane.f32.xlu1 %v1284_v4  ;;  %784 = vmatprep.subr.bf16.mxu0 %v901_v18 }
  0x65   : > { %312 = vadd.xlane.f32.xlu0 %v1286_v5  ;;  %806 = vmatprep.subr.bf16.mxu1 %v901_v18  ;;  %p991_p5 = pnand %p990_p0, %p984_p8 }
  0x67   : > { %785 = vmatpush3.bf16.msra.mxu0 %v901_v18  ;;  %814 = vmatpush3.bf16.msra.mxu1 %v901_v18 }
  0x68   : > { %322 = vadd.xlane.f32.xlu1 %v1292_v6  ;;  %786 = vmatprep.subr.bf16.mxu0 %v902_v19 }
  0x69   : > { %320 = vadd.xlane.f32.xlu0 %v1294_v7  ;;  %807 = vmatprep.subr.bf16.mxu1 %v902_v19 }
  0x6b   : > { %787 = vmatpush3.bf16.msra.mxu0 %v902_v19  ;;  %815 = vmatpush3.bf16.msra.mxu1 %v902_v19 }
  0x6c   : > { %343 = vadd.xlane.f32.xlu1 %v334_v8  ;;  %788 = vmatprep.subr.bf16.mxu0 %v903_v20 }
  0x6d   : > { %341 = vadd.xlane.f32.xlu0 %v333_v9  ;;  %808 = vmatprep.subr.bf16.mxu1 %v903_v20 }
  0x6f   : > { %789 = vmatpush3.bf16.msra.mxu0 %v903_v20  ;;  %816 = vmatpush3.bf16.msra.mxu1 %v903_v20 }
  0x70   : > { %351 = vadd.xlane.f32.xlu1 %v338_v10  ;;  %790 = vmatprep.subr.bf16.mxu0 %v904_v21 }
  0x71   : > { %349 = vadd.xlane.f32.xlu0 %v337_v11  ;;  %809 = vmatprep.subr.bf16.mxu1 %v904_v21 }
  0x73   : > { %791 = vmatpush3.bf16.msra.mxu0 %v904_v21  ;;  %817 = vmatpush3.bf16.msra.mxu1 %v904_v21 }
  0x74   : > { %347 = vadd.xlane.f32.xlu1 %v336_v12  ;;  %792 = vmatprep.subr.bf16.mxu0 %v905_v22 }
  0x75   : > { %345 = vadd.xlane.f32.xlu0 %v335_v13  ;;  %810 = vmatprep.subr.bf16.mxu1 %v905_v22 }
  0x77   : > { %793 = vmatpush3.bf16.msra.mxu0 %v905_v22  ;;  %818 = vmatpush3.bf16.msra.mxu1 %v905_v22 }
  0x78   : > { %355 = vadd.xlane.f32.xlu1 %v340_v14  ;;  %794 = vmatprep.subr.bf16.mxu0 %v906_v23 }
  0x79   : > { %353 = vadd.xlane.f32.xlu0 %v339_v15  ;;  %811 = vmatprep.subr.bf16.mxu1 %v906_v23 }
  0x7b   : > { %795 = vmatpush3.bf16.msra.mxu0 %v906_v23  ;;  %819 = vmatpush3.bf16.msra.mxu1 %v906_v23 }
  0xe9   : > { %v317_v24 = vpop.xlane.xlu1 %316 }
  0xea   : > { %v309_v25 = vpop.xlane.xlu0 %308  ;;  %v1318_v34 = vmul.f32 0.0078125, %v317_v24 }
  0xeb   : > { %v1314_v32 = vmul.f32 0.0078125, %v309_v25 }
  0xec   : > { %v369_v44 = vmul.f32 %v1318_v34, %v1318_v34 }
  0xed   : > { %v319_v26 = vpop.xlane.xlu1 %318  ;;  %v365_v38 = vmul.f32 %v1314_v32, %v1314_v32 }
  0xee   : > { %v311_v27 = vpop.xlane.xlu0 %310  ;;  %v1320_v35 = vmul.f32 0.0078125, %v319_v26 }
  0xef   : > { %v1316_v33 = vmul.f32 0.0078125, %v311_v27 }
  0xf0   : > { %v370_v45 = vmul.f32 %v1320_v35, %v1320_v35 }
  0xf1   : > { %v315_v28 = vpop.xlane.xlu1 %314  ;;  %v366_v39 = vmul.f32 %v1316_v33, %v1316_v33 }
  0xf2   : > { %v313_v29 = vpop.xlane.xlu0 %312  ;;  %v1330_v46 = vmul.f32 0.0078125, %v315_v28 }
  0xf3   : > { %v1332_v53 = vmul.f32 0.0078125, %v313_v29 }
  0xf4   : > { %v368_v58 = vmul.f32 %v1330_v46, %v1330_v46 }
  0xf5   : > { %v323_v30 = vpop.xlane.xlu1 %322  ;;  %v367_v10 = vmul.f32 %v1332_v53, %v1332_v53 }
  0xf6   : > { %v321_v31 = vpop.xlane.xlu0 %320  ;;  %v1336_v59 = vmul.f32 0.0078125, %v323_v30  ;;  %v750_v30 = vld [vmem:[%s1429_s1] ss:$0 sm:$0xff] }
  0xf7   : > { %v1338_v60 = vmul.f32 0.0078125, %v321_v31 }
  0xf8   : > { %v372_v15 = vmul.f32 %v1336_v59, %v1336_v59 }
  0xf9   : > { %v344_v36 = vpop.xlane.xlu1 %343  ;;  %v371_v16 = vmul.f32 %v1338_v60, %v1338_v60 }
  0xfa   : > { %v342_v37 = vpop.xlane.xlu0 %341  ;;  %v358_v40 = vmul.f32 0.0078125, %v344_v36 }
  0xfb   : > { %v357_v41 = vmul.f32 0.0078125, %v342_v37 }
  0xfc   : > { %v374_v42 = vsub.f32 %v358_v40, %v366_v39 }
  0xfd   : > { %v373_v43 = vsub.f32 %v357_v41, %v365_v38  ;;  %v352_v47 = vpop.xlane.xlu1 %351  ;;  %v751_v41 = vld [vmem:[%s1430_s2] ss:$0 sm:$0xff] }
  0xfe   : > { %v350_v48 = vpop.xlane.xlu0 %349  ;;  %v382_v49 = vmax.f32 %v374_v42, 0.0  ;;  %v362_v51 = vmul.f32 0.0078125, %v352_v47 }
  0xff   : > { %v381_v50 = vmax.f32 %v373_v43, 0.0  ;;  %v361_v52 = vmul.f32 0.0078125, %v350_v48 }
 0x100   : > { %v390_v54 = vadd.f32 1e-05, %v382_v49  ;;  %v378_v56 = vsub.f32 %v362_v51, %v370_v45 }
 0x101   : > { %v389_v55 = vadd.f32 1e-05, %v381_v50  ;;  %v377_v57 = vsub.f32 %v361_v52, %v369_v44  ;;  %v348_v61 = vpop.xlane.xlu1 %347 }
 0x102   : > { %v346_v62 = vpop.xlane.xlu0 %345  ;;  %907 = vrsqrt.f32 %v390_v54  ;;  %v386_v63 = vmax.f32 %v378_v56, 0.0  ;;  %v360_v9 = vmul.f32 0.0078125, %v348_v61 }
 0x103   : > { %v385_v8 = vmax.f32 %v377_v57, 0.0  ;;  %909 = vrsqrt.f32 %v389_v55  ;;  %v359_v11 = vmul.f32 0.0078125, %v346_v62 }
 0x104   : > { %v394_v12 = vadd.f32 1e-05, %v386_v63  ;;  %v376_v14 = vsub.f32 %v360_v9, %v368_v58 }
 0x105   : > { %v393_v13 = vadd.f32 1e-05, %v385_v8  ;;  %v375_v17 = vsub.f32 %v359_v11, %v367_v10  ;;  %v356_v18 = vpop.xlane.xlu1 %355 }
 0x106   : > { %v354_v19 = vpop.xlane.xlu0 %353  ;;  %911 = vrsqrt.f32 %v394_v12  ;;  %v384_v20 = vmax.f32 %v376_v14, 0.0  ;;  %v364_v21 = vmul.f32 0.0078125, %v356_v18 }
 0x107   : > { %v363_v22 = vmul.f32 0.0078125, %v354_v19  ;;  %913 = vrsqrt.f32 %v393_v13  ;;  %v383_v23 = vmax.f32 %v375_v17, 0.0 }
 0x108   : > { %v392_v24 = vadd.f32 1e-05, %v384_v20  ;;  %v380_v25 = vsub.f32 %v364_v21, %v372_v15 }
 0x109   : > { %v379_v26 = vsub.f32 %v363_v22, %v371_v16  ;;  %v391_v27 = vadd.f32 1e-05, %v383_v23 }
 0x10a   : > { %915 = vrsqrt.f32 %v392_v24  ;;  %v388_v28 = vmax.f32 %v380_v25, 0.0 }
 0x10b   : > { %v387_v29 = vmax.f32 %v379_v26, 0.0  ;;  %917 = vrsqrt.f32 %v391_v27 }
 0x10c   : > { %v908_v31 = vpop.eup %907  ;;  %v396_v36 = vadd.f32 1e-05, %v388_v28 }
 0x10d   : > { %v395_v37 = vadd.f32 1e-05, %v387_v29  ;;  %v910_v38 = vpop.eup %909  ;;  %v413_v39 = vmul.f32 %v908_v31, %v750_v30 }
 0x10e   : > { %919 = vrsqrt.f32 %v396_v36  ;;  %v412_v40 = vmul.f32 %v910_v38, %v750_v30 }
 0x10f   : > { %921 = vrsqrt.f32 %v395_v37  ;;  %v422_v42 = vmul.f32 %v413_v39, %v1316_v33  ;;  %v444_v48 = vmul.f32 %v413_v39, %v1282_v3 }
 0x110   : > { %v912_v43 = vpop.eup %911  ;;  %v421_v44 = vmul.f32 %v412_v40, %v1314_v32  ;;  %v443_v51 = vmul.f32 %v412_v40, %v1276_v1 }
 0x111   : > { %v914_v45 = vpop.eup %913  ;;  %v436_v47 = vsub.f32 %v751_v41, %v422_v42  ;;  %v417_v49 = vmul.f32 %v912_v43, %v750_v30 }
 0x112   : > { %v435_v50 = vsub.f32 %v751_v41, %v421_v44  ;;  %v416_v52 = vmul.f32 %v914_v45, %v750_v30 }
 0x113   : > { %v452_v54 = vadd.f32 %v444_v48, %v436_v47  ;;  %v426_v55 = vmul.f32 %v417_v49, %v1320_v35  ;;  %v448_v32 = vmul.f32 %v417_v49, %v1280_v2 }
 0x114   : > { %v916_v56 = vpop.eup %915  ;;  %v451_v57 = vadd.f32 %v443_v51, %v435_v50  ;;  %v425_v58 = vmul.f32 %v416_v52, %v1318_v34  ;;  %v447_v3 = vmul.f32 %v416_v52, %v1274_v0 }
 0x115   : > { %v918_v33 = vpop.eup %917  ;;  %v440_v61 = vsub.f32 %v751_v41, %v426_v55  ;;  %v415_v62 = vmul.f32 %v916_v56, %v750_v30 }
 0x116   : > { %v459_v63 = vpack.c.bf16 %v452_v54, %v451_v57  ;;  %v439_v8 = vsub.f32 %v751_v41, %v425_v58  ;;  %v414_v9 = vmul.f32 %v918_v33, %v750_v30 }
 0x117   : > { %v456_v10 = vadd.f32 %v448_v32, %v440_v61  ;;  %v424_v1 = vmul.f32 %v415_v62, %v1330_v46  ;;  %v446_v14 = vmul.f32 %v415_v62, %v1284_v4 }
 0x118   : > { %v920_v11 = vpop.eup %919  ;;  %796 = vmatprep.mubr.bf16.mxu0 %v459_v63  ;;  %v455_v35 = vadd.f32 %v447_v3, %v439_v8  ;;  %v423_v12 = vmul.f32 %v414_v9, %v1332_v53  ;;  %v445_v17 = vmul.f32 %v414_v9, %v1286_v5 }
 0x119   : > { %v922_v13 = vpop.eup %921  ;;  %v438_v34 = vsub.f32 %v751_v41, %v424_v1  ;;  %v419_v15 = vmul.f32 %v920_v11, %v750_v30 }
 0x11a   : > { %v461_v2 = vpack.c.bf16 %v456_v10, %v455_v35  ;;  %v437_v16 = vsub.f32 %v751_v41, %v423_v12  ;;  %v418_v18 = vmul.f32 %v922_v13, %v750_v30 }
 0x11b   : > { %v454_v0 = vadd.f32 %v446_v14, %v438_v34  ;;  %v428_v19 = vmul.f32 %v419_v15, %v1336_v59  ;;  %v450_v53 = vmul.f32 %v419_v15, %v1292_v6  ;;  %v752_v59 = vld [vmem:[%s1432_s4] ss:$0 sm:$0xff] }
 0x11c   : > { %800 = vmatprep.mubr.bf16.mxu1 %v461_v2  ;;  %v453_v46 = vadd.f32 %v445_v17, %v437_v16  ;;  %v427_v20 = vmul.f32 %v418_v18, %v1338_v60  ;;  %v449_v4 = vmul.f32 %v418_v18, %v1294_v7 }
 0x11d   : > { %v442_v21 = vsub.f32 %v751_v41, %v428_v19 }
 0x11e   : > { %v460_v22 = vpack.c.bf16 %v454_v0, %v453_v46  ;;  %v441_v23 = vsub.f32 %v751_v41, %v427_v20 }
 0x11f   : > { %v458_v24 = vadd.f32 %v450_v53, %v442_v21 }
 0x120   : > { %797 = vmatmul.mubr.bf16.vlgmr.msra.gmra.mrb[0].mxu0 %v460_v22  ;;  %v457_v25 = vadd.f32 %v449_v4, %v441_v23 }
 0x122   : > { %v462_v5 = vpack.c.bf16 %v458_v24, %v457_v25 }
 0x124   : > { %801 = vmatmul.mubr.bf16.vlgmr.msra.gmra.mrb[0].mxu1 %v462_v5 }
 0x1f3   : > { %v798_v26 = vpop.f32.mrb[0].mxu0 }
 0x1f4   : > { %v585_v60 = vadd.f32 %v798_v26, %v752_v59  ;;  %v576_v27 = vpop.f32.mrb[1].mxu0 }
 0x1f5   : > { %v577_v28 = vadd.f32 %v752_v59, %v576_v27  ;;  %v799_v29 = vpop.f32.mrb[2].mxu0 }
 0x1f6   : > { %609 = vst [vmem:[%s289_s11 + $0x10] sm:$0xff] %v585_v60  ;;  %v588_v6 = vadd.f32 %v799_v29, %v752_v59  ;;  %v579_v7 = vpop.f32.mrb[3].mxu0 }
 0x1f7   : > { %607 = vst [vmem:[%s289_s11] sm:$0xff] %v577_v28  ;;  %v580_v30 = vadd.f32 %v752_v59, %v579_v7  ;;  %v802_v31 = vpop.f32.mrb[0].mxu1 }
 0x1f8   : > { %610 = vst [vmem:[%s289_s11 + $0x18] sm:$0xff] %v588_v6  ;;  %v601_v36 = vadd.f32 %v802_v31, %v752_v59  ;;  %v592_v37 = vpop.f32.mrb[1].mxu1 }
 0x1f9   : > { %608 = vst [vmem:[%s289_s11 + $0x8] sm:$0xff] %v580_v30  ;;  %v593_v38 = vadd.f32 %v752_v59, %v592_v37  ;;  %v803_v39 = vpop.f32.mrb[2].mxu1 }
 0x1fa   : > { %613 = vst [vmem:[%s289_s11 + $0x30] sm:$0xff] %v601_v36  ;;  %v604_v40 = vadd.f32 %v803_v39, %v752_v59  ;;  %v595_v41 = vpop.f32.mrb[3].mxu1 }
 0x1fb   : > { %611 = vst [vmem:[%s289_s11 + $0x20] sm:$0xff] %v593_v38  ;;  %v596_v42 = vadd.f32 %v752_v59, %v595_v41 }
 0x1fc   : > { %614 = vst [vmem:[%s289_s11 + $0x38] sm:$0xff] %v604_v40 }
 0x1fd   : > { %612 = vst [vmem:[%s289_s11 + $0x28] sm:$0xff] %v596_v42 }
 0x1fe   : > { %994 = shalt.err (!%p991_p5)
}
 0x1ff   : > { %s995_s30 = scalar_lea.hbm %s1379_s21, 1024  ;;  %s999_s10 = scalar_lea.hbm %s1433_s5, 2048 }
 0x200   : > { %p996_p9 = scmp.ne.s32.totalorder %s1379_s21, %s995_s30  ;;  %p1000_p3 = scmp.lt.u32.totalorder %s1379_s21, %s1433_s5 }
 0x201   : > { %p1001_p7 = scmp.lt.u32.totalorder %s999_s10, %s995_s30  ;;  %p1003_p4 = scmp.lt.u32.totalorder %s995_s30, %s1379_s21 }
 0x202   : > { %p997_p1 = pnand %p996_p9, %p1204_p10 }
 0x203   : > { %p1002_p13 = por %p1001_p7, %p1000_p3 }
 0x204   : > { %p998_p2 = pneg %p997_p1 }
 0x205   : > { %p1004_p6 = por %p1003_p4, %p1002_p13 }
 0x207   : > { %p1005_p8 = pnand %p1004_p6, %p998_p2 }
 0x209   : > { %1008 = shalt.err (!%p1005_p8)
}
 0x20a   : > { %s1076_s8 = smov 128   ;;  %s1077_s12 = smov 8  }
 0x20b   : > { %826 = dma.vmem_to_hbm [thread:$0]  (%p1204_p10), %s1374_s14, 1024, %s1379_s21, %s616_s24, %s1076_s8, %s1076_s8, %s1077_s12  }
 0x20c PF: > { %s645_s7 = sand.u32 1, %s1047_s18   ;;  %p1451_p12 = scmp.ne.s32.totalorder %s1441_s29, 0 }
 0x20d   : > { %p1452_p11 = scmp.ge.s32.totalorder %s1067_s23, 2  ;;  %s646_s27 = scalar_lea.sflag [#allocation5], %s645_s7 }
 0x20f   : > { %p837_p0 = pnand %p1452_p11, %p1451_p12 }
 0x211   : > { %1042 = dma.done.wait (!%p837_p0), %s646_s27, 1024  }
 0x212   : > { %1044 = vsyncadd (!%p837_p0), %s646_s27, 4294966272  ;;  %s22_s23 = sadd.s32 1, %s1067_s23   ;;  %s1453_s18 = smov %s1051_s19 }
 0x213   : > { %p19_p5 = scmp.ge.s32.totalorder %s22_s23, 4   ;;  %s1454_s19 = smov %s1055_s20 }
 0x214   : > { %s1455_s20 = smov %s1213_s15  ;;  %s1456_s21 = smov %s1063_s22 }
 0x215   : > { %s1457_s22 = smov %s1459_s9  ;;  %21 = sbr.rel (!%p19_p5) target bundleno = 7 (0x7), region = 97 }
 0x21c   :  { %651 = vsyncpa [#allocation4], 1 }
 0x21d   :  { %653 = vsyncpa [#allocation4 + $0x1], 1 }
 0x21e   :  { %654 = vsyncpa [#allocation7], 1 }
 0x21f   :  { %655 = vsyncpa [#allocation5], 1 }
 0x220   :  { %657 = vsyncpa [#allocation5 + $0x1], 1 }

</bundles_post_ra>
